<compile_context>
chip_gen: v7x
topology: tpu7x:2x2x1
jax: 0.10.0
libtpu: 0.0.40
codegen_flags: <defaults>
</compile_context>

<pallas_src>
import functools

import jax
import jax.numpy as jnp
from jax.experimental import pallas as pl
from jax.experimental.pallas import tpu as pltpu

EPS = 1e-5                      # torch.nn.BatchNorm2d default eps
LANE = 128                      # TPU lane width
TILE_M = 2048                   # rows (N*Ho*Wo) per grid step
VMEM_LIMIT = 48 * 1024 * 1024   # < v7x 64 MiB physical, > v5e/v6e scoped defaults


# ----------------------------------------------------------------------------- kernels
def _conv_stats_kernel(p_ref, w_ref, y_ref, stats_ref):
    """y = patches @ w (bf16 MXU, f32 acc); y stored bf16, stats from the f32 acc."""
    y = jnp.dot(p_ref[...], w_ref[...], preferred_element_type=jnp.float32)
    y_ref[...] = y.astype(y_ref.dtype)
    s1 = jnp.sum(y, axis=0, keepdims=True)            # (1, C)  per-channel sum
    s2 = jnp.sum(y * y, axis=0, keepdims=True)        # (1, C)  per-channel sum of squares
    stats_ref[0] = jnp.concatenate([s1, s2], axis=0)  # single (2, C) store


def _affine_kernel(y_ref, s_ref, b_ref, o_ref, *, relu_out=False):
    out = y_ref[...].astype(jnp.float32) * s_ref[...] + b_ref[...]
    if relu_out:                        # fuse the NEXT stage's input ReLU
        out = jnp.maximum(out, 0.0)
    o_ref[...] = out.astype(o_ref.dtype)


def _affine_add_kernel(y_ref, s_ref, b_ref, r_ref, o_ref):
    out = y_ref[...].astype(jnp.float32) * s_ref[...] + b_ref[...] + r_ref[...]
    o_ref[...] = out.astype(o_ref.dtype)


def _affine_add_pool_conv_kernel(y_ref, s_ref, b_ref, p_ref, wd_ref, o_ref):
    # residual = (avg-pooled x) @ W_1x1, computed in-kernel so it never hits HBM.
    r = jnp.dot(p_ref[...], wd_ref[...], preferred_element_type=jnp.float32)
    out = y_ref[...].astype(jnp.float32) * s_ref[...] + b_ref[...] + r
    o_ref[...] = out.astype(o_ref.dtype)


# ----------------------------------------------------------------------------- glue
def _round_up(x, m):
    return (x + m - 1) // m * m


def _im2col(x_nhwc, ksize, stride, pad):
    """Returns (patches (N*Ho*Wo, k*k*C), (N, Ho, Wo)); column order = (ky, kx, c)."""
    N, H, W, C = x_nhwc.shape
    xp = jnp.pad(x_nhwc, ((0, 0), (pad, pad), (pad, pad), (0, 0)))
    Ho = (H + 2 * pad - ksize) // stride + 1
    Wo = (W + 2 * pad - ksize) // stride + 1
    cols = []
    for ky in range(ksize):
        for kx in range(ksize):
            cols.append(xp[:, ky:ky + stride * (Ho - 1) + 1:stride,
                           kx:kx + stride * (Wo - 1) + 1:stride, :])
    patches = jnp.stack(cols, axis=3)                       # (N, Ho, Wo, k*k, C)
    return patches.reshape(N * Ho * Wo, ksize * ksize * C), (N, Ho, Wo)


def _pad2(a, rows, cols, dtype=None):
    out = jnp.pad(a, ((0, rows - a.shape[0]), (0, cols - a.shape[1])))
    return out.astype(dtype) if dtype is not None else out


def _pick_bm(M):
    """Row-tile size: big tiles for DMA efficiency, but always >= 2 grid blocks
    so v7x's two TensorCores both get work and the auto-pipeline can overlap."""
    bm = min(TILE_M, _round_up(M, 16))
    if _round_up(M, bm) // bm < 2 and bm >= 32:
        bm = _round_up((bm + 1) // 2, 16)
    return bm


def _conv_bn(x_nhwc, w_hwio, gamma, beta, ksize, stride, pad, *,
             relu_out=False, out_dtype=jnp.float32,
             residual_nhwc=None, pooled_nhwc=None, w_down=None):
    """Conv(ksize, stride, pad) on an already-ReLU'd input + batch-stat BN.

    Optional fusions: relu_out (ReLU the BN output), residual_nhwc (add a
    precomputed f32 residual), pooled_nhwc + w_down (add an AvgPool2x2 + 1x1-conv
    residual computed in-kernel).
    """
    cout = w_hwio.shape[-1]
    # bf16 BEFORE im2col: the 9x-expanded patch matrix is materialized once, in bf16.
    patches, (N, Ho, Wo) = _im2col(x_nhwc.astype(jnp.bfloat16), ksize, stride, pad)
    M, K = patches.shape
    C_pad = _round_up(cout, LANE)
    K_pad = _round_up(K, LANE)
    bm = _pick_bm(M)
    M_pad = _round_up(M, bm)
    nblk = M_pad // bm

    p = _pad2(patches, M_pad, K_pad)                                   # bf16
    w = _pad2(w_hwio.reshape(K, cout), K_pad, C_pad, jnp.bfloat16)

    params = pltpu.CompilerParams(dimension_semantics=("parallel",),
                                  vmem_limit_bytes=VMEM_LIMIT)

    # ---- pass 1: tiled conv matmul (bf16 output) + per-block BN partial sums -------
    y, part = pl.pallas_call(
        _conv_stats_kernel,
        grid=(nblk,),
        in_specs=[pl.BlockSpec((bm, K_pad), lambda i: (i, 0)),
                  pl.BlockSpec((K_pad, C_pad), lambda i: (0, 0))],
        out_specs=[pl.BlockSpec((bm, C_pad), lambda i: (i, 0)),
                   pl.BlockSpec((1, 2, C_pad), lambda i: (i, 0, 0))],
        out_shape=[jax.ShapeDtypeStruct((M_pad, C_pad), jnp.bfloat16),
                   jax.ShapeDtypeStruct((nblk, 2, C_pad), jnp.float32)],
        compiler_params=params,
    )(p, w)

    # ---- fold BN into one scale/shift per channel (tiny per-channel math, f32) -----
    sums = part.sum(axis=0)                                   # (2, C_pad)
    mean = sums[0] / M                                        # padded rows are exact zeros
    var = jnp.maximum(sums[1] / M - mean * mean, 0.0)
    g = jnp.pad(gamma, (0, C_pad - cout))
    b = jnp.pad(beta, (0, C_pad - cout))
    scale = (g * jax.lax.rsqrt(var + EPS)).reshape(1, C_pad)
    shift = (b - mean * scale[0]).reshape(1, C_pad)

    # ---- pass 2: tiled affine epilogue (+ fused residual / ReLU) -------------------
    in_arrays = [y, scale, shift]
    in_specs = [pl.BlockSpec((bm, C_pad), lambda i: (i, 0)),
                pl.BlockSpec((1, C_pad), lambda i: (0, 0)),
                pl.BlockSpec((1, C_pad), lambda i: (0, 0))]
    if pooled_nhwc is not None:
        cin = pooled_nhwc.shape[-1]
        # Pad Cin only to the bf16 packing multiple (16), not to 128 lanes: the block's
        # last dim equals the full array dim, so the spec stays legal and the pooled
        # tensor's DMA is not inflated 32x at small Cin.
        ci_pad = _round_up(cin, 16)
        pooled = _pad2(pooled_nhwc.reshape(M, cin).astype(jnp.bfloat16), M_pad, ci_pad)
        wd = _pad2(w_down, ci_pad, C_pad, jnp.bfloat16)
        kernel = _affine_add_pool_conv_kernel
        in_arrays += [pooled, wd]
        in_specs += [pl.BlockSpec((bm, ci_pad), lambda i: (i, 0)),
                     pl.BlockSpec((ci_pad, C_pad), lambda i: (0, 0))]
    elif residual_nhwc is not None:
        # residual stays f32: keeps the skip-connection add at full precision.
        r = _pad2(residual_nhwc.reshape(M, cout).astype(jnp.float32), M_pad, C_pad)
        kernel = _affine_add_kernel
        in_arrays += [r]
        in_specs += [pl.BlockSpec((bm, C_pad), lambda i: (i, 0))]
    else:
        kernel = functools.partial(_affine_kernel, relu_out=relu_out)

    out = pl.pallas_call(
        kernel,
        grid=(nblk,),
        in_specs=in_specs,
        out_specs=pl.BlockSpec((bm, C_pad), lambda i: (i, 0)),
        out_shape=jax.ShapeDtypeStruct((M_pad, C_pad), out_dtype),
        compiler_params=params,
    )(*in_arrays)

    # TODO(synk): a halo'd-slab direct conv in pass 1 would remove both the im2col
    # amplification and this inter-stage slice/reshape copy (now half-cost in bf16).
    return out[:M, :cout].reshape(N, Ho, Wo, cout)


# ----------------------------------------------------------------------------- module
class ResNetBasicblockPallas:
    """JAX/Pallas re-implementation of NAS-Bench-201 ResNetBasicblock (forward only).

    BatchNorm uses per-call batch statistics (biased variance) — this matches the
    original module, which sets track_running_stats=False.
    """

    def __init__(self, inplanes, planes, stride, key):
        assert stride in (1, 2), f"invalid stride {stride}"
        self.inplanes, self.planes, self.stride = inplanes, planes, stride
        ks = jax.random.split(key, 9)

        def conv_w(k, kh, kw, cin, cout):
            fan_in = kh * kw * cin
            return jax.random.normal(k, (kh, kw, cin, cout), jnp.float32) / jnp.sqrt(fan_in)

        # conv_a: ReLUConvBN(inplanes, planes, 3, stride, 1, 1, affine=True)
        self.wa = conv_w(ks[0], 3, 3, inplanes, planes)
        self.ga = 1.0 + 0.1 * jax.random.normal(ks[1], (planes,), jnp.float32)
        self.ba = 0.1 * jax.random.normal(ks[2], (planes,), jnp.float32)
        # conv_b: ReLUConvBN(planes, planes, 3, 1, 1, 1, affine=True)
        self.wb = conv_w(ks[3], 3, 3, planes, planes)
        self.gb = 1.0 + 0.1 * jax.random.normal(ks[4], (planes,), jnp.float32)
        self.bb = 0.1 * jax.random.normal(ks[5], (planes,), jnp.float32)
        # downsample branch
        if stride == 2:
            self.wd = conv_w(ks[6], 1, 1, inplanes, planes).reshape(inplanes, planes)
            self.gd = self.bd = None
        elif inplanes != planes:
            self.wd = conv_w(ks[6], 1, 1, inplanes, planes)
            self.gd = 1.0 + 0.1 * jax.random.normal(ks[7], (planes,), jnp.float32)
            self.bd = 0.1 * jax.random.normal(ks[8], (planes,), jnp.float32)
        else:
            self.wd = self.gd = self.bd = None

    def forward(self, x_nchw):
        x = jnp.transpose(x_nchw, (0, 2, 3, 1)).astype(jnp.float32)    # NCHW -> NHWC
        # ReLU applied ONCE to the un-expanded input, cast to bf16 BEFORE im2col.
        xr = jnp.maximum(x, 0.0).astype(jnp.bfloat16)
        # conv_a (ReLU->Conv3x3(stride)->BN); conv_b's input ReLU is fused into a's
        # epilogue and stage-a is stored bf16 (it is only consumed as a bf16 matmul
        # operand by conv_b).
        a = _conv_bn(xr, self.wa, self.ga, self.ba, 3, self.stride, 1,
                     relu_out=True, out_dtype=jnp.bfloat16)
        if self.stride == 2:
            N, H, W, C = x.shape
            assert H % 2 == 0 and W % 2 == 0, "AvgPool2d(2,2) path assumes even H, W"
            pooled = x.reshape(N, H // 2, 2, W // 2, 2, C).mean(axis=(2, 4))  # AvgPool2d(2,2)
            out = _conv_bn(a, self.wb, self.gb, self.bb, 3, 1, 1,
                           pooled_nhwc=pooled, w_down=self.wd)   # residual fused in-kernel
        elif self.inplanes != self.planes:
            # 1x1 ReLUConvBN residual still round-trips HBM once (see TODO above).
            residual = _conv_bn(xr, self.wd, self.gd, self.bd, 1, 1, 0)
            out = _conv_bn(a, self.wb, self.gb, self.bb, 3, 1, 1, residual_nhwc=residual)
        else:
            out = _conv_bn(a, self.wb, self.gb, self.bb, 3, 1, 1, residual_nhwc=x)
        return jnp.transpose(out, (0, 3, 1, 2))                         # NHWC -> NCHW


# ----------------------------------------------------------------------------- pure-JAX reference
def _ref_relu_conv_bn(x_nhwc, w_hwio, gamma, beta, ksize, stride, pad):
    """Mirrors the kernel's numerics: bf16 patches/weights, f32 accumulation and BN
    statistics, and a bf16-rounded conv output feeding the affine step."""
    cout = w_hwio.shape[-1]
    xr = jnp.maximum(x_nhwc.astype(jnp.float32), 0.0).astype(jnp.bfloat16)
    patches, (N, Ho, Wo) = _im2col(xr, ksize, stride, pad)
    y = jnp.dot(patches, w_hwio.reshape(-1, cout).astype(jnp.bfloat16),
                preferred_element_type=jnp.float32)
    mean = y.mean(0)
    var = jnp.maximum((y * y).mean(0) - mean * mean, 0.0)
    scale = gamma * jax.lax.rsqrt(var + EPS)
    shift = beta - mean * scale
    yq = y.astype(jnp.bfloat16).astype(jnp.float32)   # kernel stores y in bf16
    return (yq * scale + shift).reshape(N, Ho, Wo, cout)


def _ref_forward(block, x_nchw):
    x = jnp.transpose(x_nchw, (0, 2, 3, 1)).astype(jnp.float32)
    a = _ref_relu_conv_bn(x, block.wa, block.ga, block.ba, 3, block.stride, 1)
    b = _ref_relu_conv_bn(a, block.wb, block.gb, block.bb, 3, 1, 1)
    if block.stride == 2:
        N, H, W, C = x.shape
        pooled = x.reshape(N, H // 2, 2, W // 2, 2, C).mean(axis=(2, 4))
        residual = jnp.dot(pooled.reshape(-1, C).astype(jnp.bfloat16),
                           block.wd.astype(jnp.bfloat16),
                           preferred_element_type=jnp.float32
                           ).reshape(N, H // 2, W // 2, -1)
    elif block.inplanes != block.planes:
        residual = _ref_relu_conv_bn(x, block.wd, block.gd, block.bd, 1, 1, 0)
    else:
        residual = x
    return jnp.transpose(residual + b, (0, 3, 1, 2))


# ----------------------------------------------------------------------------- main
if __name__ == "__main__":
    key = jax.random.PRNGKey(0)

    configs = [
        # (N, C_in, H, W, planes, stride)
        (2, 4, 16, 16, 8, 2),    # AvgPool + 1x1-conv downsample path (fused residual matmul)
        (2, 4, 16, 16, 8, 1),    # 1x1 ReLUConvBN downsample path
        (2, 8, 32, 32, 8, 1),    # identity residual path; M=2048 exercises the multi-tile grid
    ]
    for idx, (N, C_in, H, W, planes, stride) in enumerate(configs):
        k_x, k_p = jax.random.split(jax.random.fold_in(key, idx))
        x = jax.random.normal(k_x, (N, C_in, H, W), jnp.float32)
        block = ResNetBasicblockPallas(C_in, planes, stride, k_p)

        out = jax.block_until_ready(block.forward(x))
        ref = jax.block_until_ready(_ref_forward(block, x))

        assert out.shape == (N, planes, H // stride, W // stride), out.shape
        err_max = jnp.max(jnp.abs(out - ref))
        err_mean = jnp.mean(jnp.abs(out - ref))
        # bf16 intermediates: a tiled-vs-monolithic f32 accumulation difference can
        # occasionally flip a bf16 rounding by one ulp (~0.4% of |y|), so the max-error
        # tolerance is 1e-2 while the mean error must stay tiny.
        assert err_mean < 1e-3, \
            f"Pallas output mean error too large (config {idx}): {err_mean:.3e}"
        assert jnp.allclose(out, ref, atol=1e-2, rtol=1e-2), \
            f"Pallas output mismatch vs JAX reference (config {idx}): max abs err {err_max:.3e}"

    print("KERNEL_OK")
</pallas_src>

<mosaic_0001>
module attributes {stable_mosaic.version = 11 : i64} {
  func.func @_conv_stats_kernel(%arg0: i32, %arg1: memref<64x128xbf16, #tpu.memory_space<vmem>>, %arg2: memref<128x128xbf16, #tpu.memory_space<vmem>>, %arg3: memref<64x128xbf16, #tpu.memory_space<vmem>>, %arg4: memref<1x2x128xf32, #tpu.memory_space<vmem>>) attributes {dimension_semantics = [#tpu.dimension_semantics<parallel>], iteration_bounds = array<i64: 2>, scalar_prefetch = 0 : i64, scratch_operands = 0 : i64, tpu.core_type = #tpu.core_type<tc>, window_params = [{transform_indices = @transform_0, window_bounds = array<i64: 64, 128>}, {pipeline_mode = #tpu.pipeline_mode<synchronous>, transform_indices = @transform_1, window_bounds = array<i64: 128, 128>}, {transform_indices = @transform_2, window_bounds = array<i64: 64, 128>}, {transform_indices = @transform_3, window_bounds = array<i64: 1, 2, 128>}]} {
    %c0 = arith.constant 0 : index
    %c0_0 = arith.constant 0 : index
    %0 = vector.load %arg1[%c0, %c0_0] : memref<64x128xbf16, #tpu.memory_space<vmem>>, vector<64x128xbf16>
    %c0_1 = arith.constant 0 : index
    %c0_2 = arith.constant 0 : index
    %1 = vector.load %arg2[%c0_1, %c0_2] : memref<128x128xbf16, #tpu.memory_space<vmem>>, vector<128x128xbf16>
    %cst = arith.constant dense<0.000000e+00> : vector<64x128xf32>
    %2 = tpu.matmul %0, %1, %cst {dimension_numbers = #tpu.dot_dimension_numbers<[1], [0], [0], [1], [0, 0, 1, 1], [], []>} : vector<64x128xbf16>, vector<128x128xbf16>, vector<64x128xf32> -> vector<64x128xf32>
    %3 = arith.truncf %2 : vector<64x128xf32> to vector<64x128xbf16>
    %c0_3 = arith.constant 0 : index
    %c0_4 = arith.constant 0 : index
    %4 = vector.load %arg3[%c0_3, %c0_4] : memref<64x128xbf16, #tpu.memory_space<vmem>>, vector<64x128xbf16>
    tpu.vector_store %arg3[%c0_3, %c0_4], %3 {strides = array<i32>} : memref<64x128xbf16, #tpu.memory_space<vmem>>, vector<64x128xbf16>,
    %cst_5 = arith.constant dense<0.000000e+00> : vector<128xf32>
    %5 = vector.multi_reduction <add>, %2, %cst_5 [0] : vector<64x128xf32> to vector<128xf32>
    %6 = vector.shape_cast %5 : vector<128xf32> to vector<1x128xf32>
    %7 = arith.mulf %2, %2 : vector<64x128xf32>
    %cst_6 = arith.constant dense<0.000000e+00> : vector<128xf32>
    %8 = vector.multi_reduction <add>, %7, %cst_6 [0] : vector<64x128xf32> to vector<128xf32>
    %9 = vector.shape_cast %8 : vector<128xf32> to vector<1x128xf32>
    %10 = tpu.concatenate %6, %9 in 0 : vector<1x128xf32>, vector<1x128xf32> -> vector<2x128xf32>
    %c0_7 = arith.constant 0 : index
    %c0_8 = arith.constant 0 : index
    %c0_9 = arith.constant 0 : index
    %11 = vector.load %arg4[%c0_7, %c0_8, %c0_9] : memref<1x2x128xf32, #tpu.memory_space<vmem>>, vector<1x2x128xf32>
    %12 = vector.shape_cast %11 : vector<1x2x128xf32> to vector<2x128xf32>
    %13 = vector.shape_cast %10 : vector<2x128xf32> to vector<1x2x128xf32>
    tpu.vector_store %arg4[%c0_7, %c0_8, %c0_9], %13 {strides = array<i32>} : memref<1x2x128xf32, #tpu.memory_space<vmem>>, vector<1x2x128xf32>,
    return
  }
  func.func @transform_0(%arg0: i32) -> (i32, i32) {
    %c0_i32 = arith.constant 0 : i32
    %c0_i32_0 = arith.constant 0 : i32
    return %arg0, %c0_i32 : i32, i32
  }
  func.func @transform_1(%arg0: i32) -> (i32, i32) {
    %c0_i32 = arith.constant 0 : i32
    %c0_i32_0 = arith.constant 0 : i32
    %c0_i32_1 = arith.constant 0 : i32
    return %c0_i32, %c0_i32_0 : i32, i32
  }
  func.func @transform_2(%arg0: i32) -> (i32, i32) {
    %c0_i32 = arith.constant 0 : i32
    %c0_i32_0 = arith.constant 0 : i32
    return %arg0, %c0_i32 : i32, i32
  }
  func.func @transform_3(%arg0: i32) -> (i32, i32, i32) {
    %c0_i32 = arith.constant 0 : i32
    %c0_i32_0 = arith.constant 0 : i32
    %c0_i32_1 = arith.constant 0 : i32
    return %arg0, %c0_i32, %c0_i32_0 : i32, i32, i32
  }
}

</mosaic_0001>

<bundles_post_ra>
// kernel: tpu_custom_call.1
= control target key start
LH: loop header
LB: loop body
LE: loop exit
PB: predicated region body
PF: predicated region fallthrough
CT: control target
= control target key end

     0   :  { %9 = vsyncpa [#allocation3], 0  ;;  %s1249_s0 = inlined_call_operand.hbm [shape: bf16[128,128], index: 0, kind: input, shape index: {}]   ;;  %s1250_s1 = inlined_call_operand.hbm [shape: bf16[128,128], index: 1, kind: input, shape index: {}]   ;;  %s1251_s2 = inlined_call_operand.hbm [shape: bf16[128,128], index: 2, kind: output, shape index: {0}]   ;;  %s1252_s3 = inlined_call_operand.hbm [shape: f32[2,2,128], index: 3, kind: output, shape index: {1}]  }
   0x1   :  { %11 = vsyncpa [#allocation3 + $0x1], 0 }
   0x2   :  { %12 = vsyncpa [#allocation6], 0 }
   0x3   :  { %13 = vsyncpa [#allocation4], 0 }
   0x4   :  { %15 = vsyncpa [#allocation4 + $0x1], 0 }
   0x5   :  { %16 = vsyncpa [#allocation9], 0 }
   0x6   :  { %18 = vsyncpa [#allocation9 + $0x1], 0  ;;  %s995_s12 = smov 0   ;;  %s997_s13 = smov 0  }
   0x7   :  { %s999_s14 = smov 0   ;;  %s1001_s15 = smov 0  }
   0x8 LB: > { %s1016_s16 = sadd.s32 4294967295, %s965_s15   ;;  %s603_s17 = sadd.s32 4294967294, %s965_s15   ;;  %s965_s15 = sphi %s1001_s15, %s1272_s15   ;;  %s961_s14 = sphi %s999_s14, %s1271_s14   ;;  %s957_s13 = sphi %s997_s13, %s1270_s13   ;;  %s953_s12 = sphi %s995_s12, %s1269_s12  }
   0x9   : > { %p44_p0 = scmp.ne.s32.totalorder %s957_s13, %s953_s12  ;;  %p1253_p1 = scmp.eq.s32.totalorder %s1016_s16, 0 }
   0xa   : > { %p95_p3 = scmp.eq.s32.totalorder %s603_s17, 1  ;;  %p604_p5 = scmp.ge.s32.totalorder %s965_s15, 1 }
   0xb   : > { %p1025_p4 = por %p1253_p1, %p44_p0  ;;  %p128_p7 = scmp.lt.s32.totalorder %s965_s15, 3 }
   0xc   : > { %p1030_p6 = por %p95_p3, %p44_p0  ;;  %s967_s21 = smov [#allocation5]  }
   0xd   : > { %s1256_s18 = scalar_select %p1025_p4, 1, 0 }
   0xe   : > { %s1257_s19 = scalar_select %p1030_p6, 1, 0 }
   0xf   : > { %p1035_p8 = pnand %p604_p5, %p128_p7  ;;  %s140_s22 = sshll.u32 %s967_s21, 4  ;;  %s1039_s22 = int_to_ptr.vmem [resolvable:$true] %s140_s22 }
  0x10   : > { %s1051_s24 = sadd.s32 1, %s965_s15   ;;  %s31_s25 = sadd.s32 1, %s961_s14 }
  0x11   : > { %s1258_s20 = scalar_select %p1035_p8, 1, 0 }
  0x12   : > { %p737_p9 = pneg %p1035_p8  ;;  %s28_s26 = ssub.s32 %s965_s15, %s1051_s24 }
  0x13   : > { %s805_s29 = scalar_lea.hbm %s1250_s1, 1024 }
  0x14   : > { %p1046_p11 = pnand %p737_p9, %p1253_p1  ;;  %p806_p12 = scmp.ne.s32.totalorder %s1250_s1, %s805_s29 }
  0x15   : > { %p812_p5 = scmp.lt.u32.totalorder %s805_s29, %s1250_s1 }
  0x16   : > { %p807_p13 = pneg %p1046_p11 }
  0x18   : > { %p808_p0 = pnand %p807_p13, %p806_p12 }
  0x1a   : > { %p809_p3 = pneg %p808_p0 }
  0x1c   : > { %p814_p7 = pnand %p812_p5, %p809_p3 }
  0x1e   : > { %817 = shalt.err (!%p814_p7)
}
  0x1f   : > { %s818_s7 = scalar_lea.vmem %s1039_s22, 1024  ;;  %p826_p2 = scmp.lt.s32.totalorder %s1039_s22, %s1039_s22 }
  0x20   : > { %p819_p9 = scmp.ne.s32.totalorder %s1039_s22, %s818_s7  ;;  %p827_p6 = scmp.lt.s32.totalorder %s818_s7, %s818_s7 }
  0x22   : > { %p821_p10 = pnand %p819_p9, %p807_p13  ;;  %p828_p4 = por %p827_p6, %p826_p2 }
  0x24   : > { %p822_p1 = pneg %p821_p10 }
  0x26   : > { %p829_p8 = pnand %p828_p4, %p822_p1 }
  0x28   : > { %832 = shalt.err (!%p829_p8)
}
  0x29   : > { %s968_s8 = smov 64   ;;  %s969_s9 = smov 4  }
  0x2a   : > { %740 = dma.hbm_to_vmem [thread:$0]  (!%p1046_p11), %s1250_s1, 1024, %s1039_s22, [#allocation6], %s968_s8, %s968_s8, %s969_s9  }
  0x2b   : > { %p29_p1 = scmp.eq.s32.totalorder %s28_s26, 0  ;;  %p38_p2 = scmp.ne.s32.totalorder %s961_s14, %s957_s13 }
  0x2c   : > { %p39_p4 = scmp.eq.s32.totalorder %s965_s15, 0  ;;  %p753_p6 = scmp.lt.s32.totalorder %s965_s15, 2 }
  0x2d   : > { %s1085_s17 = scalar_select %p29_p1, %s961_s14, %s31_s25  }
  0x2e   : > { %p40_p8 = por %p39_p4, %p38_p2  ;;  %p1260_p10 = scmp.eq.s32.totalorder %s1016_s16, 1 }
  0x2f   : > { %s154_s23 = sand.u32 1, %s961_s14   ;;  %s642_s27 = sshll.u32 %s965_s15, 9 }
  0x30   : > { %p1089_p12 = por %p1260_p10, %p38_p2  ;;  %s607_s28 = sshll.u32 %s154_s23, 5 }
  0x31   : > { %s1098_s4 = scalar_lea.hbm %s1249_s0, %s642_s27  ;;  %s158_s22 = scalar_lea.vmem [#allocation2], %s607_s28 }
  0x32   : > { %s165_s25 = sshll.u32 %s158_s22, 4  ;;  %p1100_p11 = pnand %p753_p6, %p40_p8  ;;  %s1104_s25 = int_to_ptr.vmem [resolvable:$true] %s165_s25 }
  0x33   : > { %s1106_s5 = scalar_lea.sflag [#allocation3], %s154_s23  ;;  %s833_s6 = scalar_lea.hbm %s1098_s4, 512 }
  0x34   : > { %p834_p13 = scmp.ne.s32.totalorder %s1098_s4, %s833_s6  ;;  %p835_p0 = pneg %p1100_p11 }
  0x35   : > { %s838_s11 = scalar_lea.hbm %s1249_s0, 1024  ;;  %p839_p7 = scmp.lt.u32.totalorder %s1098_s4, %s1249_s0 }
  0x36   : > { %p836_p3 = pnand %p835_p0, %p834_p13  ;;  %p840_p9 = scmp.lt.u32.totalorder %s838_s11, %s833_s6 }
  0x37   : > { %p842_p2 = scmp.lt.u32.totalorder %s833_s6, %s1098_s4 }
  0x38   : > { %p837_p5 = pneg %p836_p3  ;;  %p841_p1 = por %p840_p9, %p839_p7 }
  0x3a   : > { %p843_p4 = por %p842_p2, %p841_p1 }
  0x3c   : > { %p844_p6 = pnand %p843_p4, %p837_p5 }
  0x3e   : > { %847 = shalt.err (!%p844_p6)
}
  0x3f   : > { %s848_s23 = scalar_lea.vmem %s1104_s25, 512  ;;  %s970_s29 = smov [#allocation2]  }
  0x40   : > { %p849_p8 = scmp.ne.s32.totalorder %s1104_s25, %s848_s23  ;;  %s853_s30 = sshll.u32 %s970_s29, 4  ;;  %s854_s30 = int_to_ptr.vmem [resolvable:$false] %s853_s30 }
  0x41   : > { %s855_s22 = scalar_lea.vmem %s854_s30, 1024  ;;  %p856_p3 = scmp.lt.s32.totalorder %s1104_s25, %s854_s30 }
  0x42   : > { %p851_p10 = pnand %p849_p8, %p835_p0  ;;  %p857_p7 = scmp.lt.s32.totalorder %s855_s22, %s848_s23 }
  0x44   : > { %p852_p13 = pneg %p851_p10  ;;  %p858_p9 = por %p857_p7, %p856_p3 }
  0x46   : > { %p859_p1 = pnand %p858_p9, %p852_p13 }
  0x48   : > { %862 = shalt.err (!%p859_p1)
}
  0x49   : > { %744 = dma.hbm_to_vmem [thread:$0]  (!%p1100_p11), %s1098_s4, 512, %s1104_s25, %s1106_s5, %s968_s8, %s968_s8, %s969_s9  }
  0x4a   : > { %p1263_p0 = scmp.ne.s32.totalorder %s1258_s20, 0 }
  0x4b   : > { %s1140_s6 = sand.u32 (!%p1263_p0), 1, %s957_s13   ;;  %p1264_p5 = scmp.ne.s32.totalorder (!%p1263_p0), %s1256_s18, 0 }
  0x4c   : > { %177 = sbr.rel (%p1263_p0) target bundleno = 389 (0x185), region = 28  ;;  %s611_s7 = sshll.u32 (!%p1263_p0), %s1140_s6, 5 }
  0x4d   : > { %s180_s10 = scalar_lea.sflag (!%p1263_p0), [#allocation3], %s1140_s6  ;;  %s1146_s26 = scalar_lea.vmem (!%p1263_p0), [#allocation2], %s611_s7 }
  0x53   : > { %936 = dma.done.wait (%p1264_p5), %s180_s10, 512  }
  0x54   : > { %938 = vsyncadd (%p1264_p5), %s180_s10, 4294966784  ;;  %p1265_p11 = scmp.eq.s32.totalorder %s1016_s16, 0 }
  0x56   : > { %940 = dma.done.wait (%p1265_p11), [#allocation6], 1024   ;;  %p1266_p2 = pmov %p1265_p11 }
  0x57   : > { %v793_v0 = vld [vmem:[#allocation5] sm:$0xff]   ;;  %v794_v1 = vld [vmem:[#allocation5 + $0x8] sm:$0xff]   ;;  %v795_v2 = vld [vmem:[#allocation5 + $0x10] sm:$0xff]   ;;  %s207_s18 = scalar_lea.vmem [#allocation7], %s611_s7  ;;  %s651_s8 = sshll.u32 %s1016_s16, 9 }
  0x58   : > { %942 = vsyncadd (%p1266_p2), [#allocation6], 4294966272  ;;  %687 = vmatprep.subr.bf16.mxu0 %v793_v0  ;;  %711 = vmatprep.subr.bf16.mxu1 %v793_v0  ;;  %v796_v3 = vld [vmem:[#allocation5 + $0x18] sm:$0xff]   ;;  %v801_v4 = vld [vmem:[%s1146_s26] sm:$0xff]   ;;  %s475_s20 = sshll.u32 %s207_s18, 4  ;;  %s1171_s25 = scalar_lea.hbm %s1251_s2, %s651_s8  ;;  %s1165_s20 = int_to_ptr.vmem [resolvable:$true] %s475_s20 }
  0x59   : > { %688 = vmatpush3.bf16.msra.mxu0 %v793_v0  ;;  %719 = vmatpush3.bf16.msra.mxu1 %v793_v0  ;;  %v803_v5 = vld [vmem:[%s1146_s26 + $0x10] sm:$0xff]   ;;  %v797_v6 = vld [vmem:[#allocation5 + $0x20] sm:$0xff]   ;;  %v798_v7 = vld [vmem:[#allocation5 + $0x28] sm:$0xff]   ;;  %s457_s5 = scalar_lea.sflag [#allocation4], %s1140_s6  ;;  %s863_s11 = scalar_lea.vmem %s1165_s20, 512 }
  0x5a   : > { %689 = vmatprep.subr.bf16.mxu0 %v794_v1  ;;  %712 = vmatprep.subr.bf16.mxu1 %v794_v1  ;;  %v799_v8 = vld [vmem:[#allocation5 + $0x30] sm:$0xff]   ;;  %v800_v9 = vld [vmem:[#allocation5 + $0x38] sm:$0xff]   ;;  %v802_v10 = vld [vmem:[%s1146_s26 + $0x8] sm:$0xff]   ;;  %p864_p4 = scmp.ne.s32.totalorder %s1165_s20, %s863_s11  ;;  %s971_s27 = smov [#allocation7]  }
  0x5b   : > { %703 = vmatprep.mubr.bf16.mxu0 %v801_v4  ;;  %707 = vmatprep.mubr.bf16.mxu1 %v803_v5  ;;  %v804_v11 = vld [vmem:[%s1146_s26 + $0x18] sm:$0xff]   ;;  %s867_s28 = sshll.u32 %s971_s27, 4  ;;  %s868_s28 = int_to_ptr.vmem [resolvable:$false] %s867_s28 }
  0x5c   : > { %p865_p6 = pnand %p864_p4, %p1089_p12  ;;  %s869_s23 = scalar_lea.vmem %s868_s28, 1024 }
  0x5d   : > { %690 = vmatpush3.bf16.msra.mxu0 %v794_v1  ;;  %720 = vmatpush3.bf16.msra.mxu1 %v794_v1  ;;  %p870_p10 = scmp.lt.s32.totalorder %s1165_s20, %s868_s28  ;;  %p871_p13 = scmp.lt.s32.totalorder %s869_s23, %s863_s11 }
  0x5e   : > { %691 = vmatprep.subr.bf16.mxu0 %v795_v2  ;;  %713 = vmatprep.subr.bf16.mxu1 %v795_v2  ;;  %p866_p8 = pneg %p865_p6 }
  0x5f   : > { %p872_p3 = por %p871_p13, %p870_p10 }
  0x61   : > { %692 = vmatpush3.bf16.msra.mxu0 %v795_v2  ;;  %721 = vmatpush3.bf16.msra.mxu1 %v795_v2  ;;  %p873_p7 = pnand %p872_p3, %p866_p8 }
  0x62   : > { %693 = vmatprep.subr.bf16.mxu0 %v796_v3  ;;  %714 = vmatprep.subr.bf16.mxu1 %v796_v3 }
  0x65   : > { %694 = vmatpush3.bf16.msra.mxu0 %v796_v3  ;;  %722 = vmatpush3.bf16.msra.mxu1 %v796_v3 }
  0x66   : > { %695 = vmatprep.subr.bf16.mxu0 %v797_v6  ;;  %715 = vmatprep.subr.bf16.mxu1 %v797_v6 }
  0x69   : > { %696 = vmatpush3.bf16.msra.mxu0 %v797_v6  ;;  %723 = vmatpush3.bf16.msra.mxu1 %v797_v6 }
  0x6a   : > { %697 = vmatprep.subr.bf16.mxu0 %v798_v7  ;;  %716 = vmatprep.subr.bf16.mxu1 %v798_v7 }
  0x6d   : > { %698 = vmatpush3.bf16.msra.mxu0 %v798_v7  ;;  %724 = vmatpush3.bf16.msra.mxu1 %v798_v7 }
  0x6e   : > { %699 = vmatprep.subr.bf16.mxu0 %v799_v8  ;;  %717 = vmatprep.subr.bf16.mxu1 %v799_v8 }
  0x71   : > { %700 = vmatpush3.bf16.msra.mxu0 %v799_v8  ;;  %725 = vmatpush3.bf16.msra.mxu1 %v799_v8 }
  0x72   : > { %701 = vmatprep.subr.bf16.mxu0 %v800_v9  ;;  %718 = vmatprep.subr.bf16.mxu1 %v800_v9 }
  0x75   : > { %702 = vmatpush3.bf16.msra.mxu0 %v800_v9  ;;  %726 = vmatpush3.bf16.msra.mxu1 %v800_v9 }
  0x78   : > { %704 = vmatmul.mubr.bf16.vlgmr.msra.gmra.mrb[0].mxu0 %v802_v10  ;;  %708 = vmatmul.mubr.bf16.vlgmr.msra.gmra.mrb[0].mxu1 %v804_v11 }
 0x14b   : > { %v705_v12 = vpop.f32.mrb[0].mxu0  ;;  %v1162_v13 = vpop.f32.mrb[0].mxu1 }
 0x14c   : > { %v348_v14 = vpop.f32.mrb[1].mxu0  ;;  %v364_v15 = vpop.f32.mrb[1].mxu1  ;;  %v434_v27 = vmul.f32 %v705_v12, %v705_v12 }
 0x14d   : > { %v706_v16 = vpop.f32.mrb[2].mxu0  ;;  %v710_v17 = vpop.f32.mrb[2].mxu1  ;;  %v432_v18 = vmul.f32 %v348_v14, %v348_v14 }
 0x14e   : > { %v660_v19 = vpack.c.bf16 %v706_v16, %v705_v12  ;;  %v351_v20 = vpop.f32.mrb[3].mxu0  ;;  %v670_v21 = vpack.c.bf16 %v710_v17, %v1162_v13  ;;  %v367_v22 = vpop.f32.mrb[3].mxu1 }
 0x14f   : > { %v655_v23 = vpack.c.bf16 %v351_v20, %v348_v14  ;;  %v419_v24 = vadd.f32 %v351_v20, %v348_v14  ;;  %v433_v25 = vmul.f32 %v351_v20, %v351_v20  ;;  %v665_v26 = vpack.c.bf16 %v367_v22, %v364_v15 }
 0x150   : > { %672 = vst [vmem:[%s207_s18 + $0x8] sm:$0xff] %v660_v19   ;;  %674 = vst [vmem:[%s207_s18 + $0x18] sm:$0xff] %v670_v21  }
 0x151   : > { %656 = vst [vmem:[%s207_s18] sm:$0xff] %v655_v23   ;;  %v420_v28 = vadd.f32 %v705_v12, %v419_v24  ;;  %v440_v29 = vadd.f32 %v433_v25, %v432_v18  ;;  %673 = vst [vmem:[%s207_s18 + $0x10] sm:$0xff] %v665_v26  }
 0x152   : > { %876 = shalt.err (!%p873_p7)
}
 0x153   : > { %s877_s29 = scalar_lea.hbm %s1171_s25, 512  ;;  %s881_s7 = scalar_lea.hbm %s1251_s2, 1024 }
 0x154   : > { %p878_p9 = scmp.ne.s32.totalorder %s1171_s25, %s877_s29  ;;  %p882_p5 = scmp.lt.u32.totalorder %s1171_s25, %s1251_s2 }
 0x155   : > { %p883_p11 = scmp.lt.u32.totalorder %s881_s7, %s877_s29  ;;  %p885_p4 = scmp.lt.u32.totalorder %s877_s29, %s1171_s25 }
 0x156   : > { %p879_p1 = pnand %p878_p9, %p1089_p12 }
 0x157   : > { %p884_p2 = por %p883_p11, %p882_p5 }
 0x158   : > { %p880_p0 = pneg %p879_p1 }
 0x159   : > { %p886_p6 = por %p885_p4, %p884_p2 }
 0x15b   : > { %p887_p8 = pnand %p886_p6, %p880_p0 }
 0x15d   : > { %890 = shalt.err (!%p887_p8)
}
 0x15e   : > { %s972_s18 = smov 64   ;;  %s973_s8 = smov 4   ;;  %v435_v30 = vmul.f32 %v706_v16, %v706_v16  ;;  %v441_v31 = vadd.f32 %v440_v29, %v434_v27  ;;  %v421_v32 = vadd.f32 %v706_v16, %v420_v28  ;;  %v436_v33 = vmul.f32 %v364_v15, %v364_v15 }
 0x15f   : > { %733 = dma.vmem_to_hbm [thread:$0]  (%p1089_p12), %s1165_s20, 512, %s1171_s25, %s457_s5, %s972_s18, %s972_s18, %s973_s8   ;;  %v437_v38 = vmul.f32 %v367_v22, %v367_v22  ;;  %v438_v39 = vmul.f32 %v1162_v13, %v1162_v13  ;;  %v439_v42 = vmul.f32 %v710_v17, %v710_v17  ;;  %vm453_vm0 = vcmask 1040384  }
 0x160   : > { %v422_v34 = vadd.f32 %v421_v32, %v364_v15  ;;  %v442_v35 = vadd.f32 %v441_v31, %v435_v30  ;;  %s614_s20 = sshll.u32 %s1140_s6, 1  ;;  %s639_s9 = sshll.u32 %s1016_s16, 5 }
 0x161   : > { %s214_s4 = scalar_lea.vmem [#allocation8], %s614_s20  ;;  %s1205_s27 = scalar_lea.hbm %s1252_s3, %s639_s9 }
 0x162   : > { %v443_v36 = vadd.f32 %v442_v35, %v436_v33  ;;  %v423_v37 = vadd.f32 %v422_v34, %v367_v22  ;;  %s491_s25 = sshll.u32 %s214_s4, 4  ;;  %s462_s28 = scalar_lea.sflag [#allocation9], %s1140_s6  ;;  %s1207_s25 = int_to_ptr.vmem [resolvable:$true] %s491_s25 }
 0x163   : > { %s891_s23 = scalar_lea.vmem %s1207_s25, 32  ;;  %s974_s16 = smov [#allocation8]  }
 0x164   : > { %v424_v40 = vadd.f32 %v1162_v13, %v423_v37  ;;  %v444_v41 = vadd.f32 %v443_v36, %v437_v38  ;;  %p892_p10 = scmp.ne.s32.totalorder %s1207_s25, %s891_s23  ;;  %s895_s29 = sshll.u32 %s974_s16, 4  ;;  %s896_s29 = int_to_ptr.vmem [resolvable:$false] %s895_s29 }
 0x165   : > { %s897_s30 = scalar_lea.vmem %s896_s29, 64  ;;  %p898_p7 = scmp.lt.s32.totalorder %s1207_s25, %s896_s29 }
 0x166   : > { %v425_v43 = vadd.f32 %v710_v17, %v424_v40  ;;  %v445_v44 = vadd.f32 %v444_v41, %v438_v39  ;;  %p893_p13 = pnand %p892_p10, %p1089_p12  ;;  %p899_p9 = scmp.lt.s32.totalorder %s897_s30, %s891_s23 }
 0x168   : > { %v426_v45 = vrot.slane %v425_v43, 4  ;;  %v446_v46 = vadd.f32 %v445_v44, %v439_v42  ;;  %p894_p3 = pneg %p893_p13  ;;  %p900_p1 = por %p899_p9, %p898_p7 }
 0x16a   : > { %v427_v47 = vadd.f32 %v426_v45, %v425_v43  ;;  %v447_v48 = vrot.slane %v446_v46, 4  ;;  %p901_p0 = pnand %p900_p1, %p894_p3 }
 0x16c   : > { %v428_v49 = vrot.slane %v427_v47, 2  ;;  %v448_v50 = vadd.f32 %v447_v48, %v446_v46 }
 0x16e   : > { %v429_v51 = vadd.f32 %v428_v49, %v427_v47  ;;  %v449_v52 = vrot.slane %v448_v50, 2 }
 0x170   : > { %v430_v53 = vrot.slane %v429_v51, 1  ;;  %v450_v54 = vadd.f32 %v449_v52, %v448_v50 }
 0x172   : > { %v451_v55 = vrot.slane %v450_v54, 1  ;;  %v431_v56 = vadd.f32 %v430_v53, %v429_v51 }
 0x174   : > { %v452_v57 = vadd.f32 %v451_v55, %v450_v54 }
 0x176   : > { %v454_v58 = vsel %vm453_vm0, %v431_v56, %v452_v57 }
 0x177   : > { %455 = vst [vmem:[%s214_s4] sm:$0x3] %v454_v58 }
 0x178   : > { %904 = shalt.err (!%p901_p0)
}
 0x179   : > { %s905_s6 = scalar_lea.hbm %s1205_s27, 32  ;;  %s909_s10 = scalar_lea.hbm %s1252_s3, 64 }
 0x17a   : > { %p906_p5 = scmp.ne.s32.totalorder %s1205_s27, %s905_s6  ;;  %p910_p4 = scmp.lt.u32.totalorder %s1205_s27, %s1252_s3 }
 0x17b   : > { %p911_p6 = scmp.lt.u32.totalorder %s909_s10, %s905_s6  ;;  %p913_p10 = scmp.lt.u32.totalorder %s905_s6, %s1205_s27 }
 0x17c   : > { %p907_p11 = pnand %p906_p5, %p1089_p12 }
 0x17d   : > { %p912_p8 = por %p911_p6, %p910_p4 }
 0x17e   : > { %p908_p2 = pneg %p907_p11 }
 0x17f   : > { %p914_p13 = por %p913_p10, %p912_p8 }
 0x181   : > { %p915_p3 = pnand %p914_p13, %p908_p2 }
 0x183   : > { %918 = shalt.err (!%p915_p3)
}
 0x184   : > { %734 = dma.vmem_to_hbm [thread:$0]  (%p1089_p12), %s1207_s25, 32, %s1205_s27, %s462_s28  }
 0x185 PF: > { %s503_s8 = sand.u32 1, %s953_s12   ;;  %p1267_p7 = scmp.ne.s32.totalorder %s1257_s19, 0 }
 0x186   : > { %p1268_p9 = scmp.ge.s32.totalorder %s965_s15, 2  ;;  %s504_s20 = scalar_lea.sflag [#allocation4], %s503_s8 }
 0x188   : > { %p746_p1 = pnand %p1268_p9, %p1267_p7 }
 0x18a   : > { %944 = dma.done.wait (!%p746_p1), %s504_s20, 512  }
 0x18b   : > { %946 = vsyncadd (!%p746_p1), %s504_s20, 4294966784  ;;  %s513_s9 = scalar_lea.sflag [#allocation9], %s503_s8 }
 0x18c   : > { %948 = dma.done.wait (!%p746_p1), %s513_s9, 32  }
 0x18d   : > { %950 = vsyncadd (!%p746_p1), %s513_s9, 4294967264  ;;  %p21_p12 = scmp.ge.s32.totalorder %s1051_s24, 4   ;;  %s1269_s12 = smov %s957_s13 }
 0x18e   : > { %s1270_s13 = smov %s961_s14  ;;  %s1271_s14 = smov %s1085_s17 }
 0x18f   : > { %s1272_s15 = smov %s1051_s24  ;;  %23 = sbr.rel (!%p21_p12) target bundleno = 8 (0x8), region = 94 }
 0x196   :  { %518 = vsyncpa [#allocation3], 1 }
 0x197   :  { %520 = vsyncpa [#allocation3 + $0x1], 1 }
 0x198   :  { %521 = vsyncpa [#allocation6], 1 }
 0x199   :  { %522 = vsyncpa [#allocation4], 1 }
 0x19a   :  { %524 = vsyncpa [#allocation4 + $0x1], 1 }
 0x19b   :  { %525 = vsyncpa [#allocation9], 1 }
 0x19c   :  { %527 = vsyncpa [#allocation9 + $0x1], 1 }

</bundles_post_ra>
